<compile_context>
chip_gen: v7x
topology: tpu7x:2x2x1
jax: 0.10.0
libtpu: 0.0.40
codegen_flags: <defaults>
</compile_context>

<pallas_src>
import jax
import jax.numpy as jnp
from jax.experimental import pallas as pl
from jax.experimental.pallas import tpu as pltpu


_LANE = 128
_DEF_MAX_BLOCK_ROWS = 1024   # 1024 x 128 x f32 = 512 KiB per stream per step


def _round_up(x: int, m: int) -> int:
    return ((x + m - 1) // m) * m


def _cdiv(a: int, b: int) -> int:
    return -(-a // b)


def _prep_stream(pred, tgt, max_rows, pad_pred, pad_tgt):
    """Flatten + cast to f32 and reshape to a sublane/lane-dense (rows, 128)
    layout.  Pad values are chosen by the caller so padded elements contribute
    exactly zero loss; padding is skipped when the stream is already aligned.

    Returns (pred2d, tgt2d, block_rows, rows, n_blocks)."""
    n = int(pred.size)
    p = pred.reshape(-1).astype(jnp.float32)
    t = tgt.reshape(-1).astype(jnp.float32)

    r_raw = _cdiv(n, _LANE)
    if r_raw <= max_rows:
        rows = _round_up(r_raw, 8)      # single block, sublane-aligned
        block_rows = rows
        n_blocks = 1
    else:
        rows = r_raw                    # multi-block; ragged tail masked in-kernel
        block_rows = max_rows
        n_blocks = _cdiv(rows, block_rows)

    length = rows * _LANE
    if length > n:
        p = jnp.pad(p, (0, length - n), constant_values=pad_pred)
        t = jnp.pad(t, (0, length - n), constant_values=pad_tgt)
    return p.reshape(rows, _LANE), t.reshape(rows, _LANE), block_rows, rows, n_blocks


def _make_kernel(n_cls, n_box, trc, trb, rows_c, rows_b, nblk_c, nblk_b):
    """All arguments are static Python ints (baked into the kernel)."""
    inv_c = 1.0 / float(n_cls)
    inv_b = 1.0 / float(n_box)
    last = nblk_c + nblk_b - 1

    def kernel(lam_ref, cp_ref, ct_ref, bp_ref, bt_ref, out_ref,
               acc_c_ref, acc_b_ref):
        i = pl.program_id(0)

        @pl.when(i == 0)
        def _init():
            acc_c_ref[...] = jnp.zeros_like(acc_c_ref)
            acc_b_ref[...] = jnp.zeros_like(acc_b_ref)

        # ---- classification blocks: numerically stable BCE-with-logits ----
        @pl.when(i < nblk_c)
        def _class_block():
            x = cp_ref[...]                                   # (trc, 128) f32
            y = ct_ref[...]
            bce = (jnp.maximum(x, 0.0) - x * y
                   + jnp.log(1.0 + jnp.exp(-jnp.abs(x))))
            # Mask rows beyond the real array (garbage from the partial last
            # Pallas block).  In-array tail pads were chosen to contribute 0.
            row = (jax.lax.broadcasted_iota(jnp.int32, (trc, _LANE), 0)
                   + i * trc)
            bce = jnp.where(row < rows_c, bce, 0.0)
            # Fold the block to one (8, 128) vreg before accumulating.
            acc_c_ref[...] += bce.reshape(trc // 8, 8, _LANE).sum(axis=0)

        # ---- bbox blocks: SmoothL1 (beta = 1.0) ----
        @pl.when(i >= nblk_c)
        def _bbox_block():
            d = bp_ref[...] - bt_ref[...]                     # (trb, 128) f32
            ad = jnp.abs(d)
            sl1 = jnp.where(ad < 1.0, 0.5 * d * d, ad - 0.5)
            row = (jax.lax.broadcasted_iota(jnp.int32, (trb, _LANE), 0)
                   + (i - nblk_c) * trb)
            sl1 = jnp.where(row < rows_b, sl1, 0.0)
            acc_b_ref[...] += sl1.reshape(trb // 8, 8, _LANE).sum(axis=0)

        # ---- finalize: cross-lane reduce, combine, lane-dense store ----
        @pl.when(i == last)
        def _finalize():
            class_loss = jnp.sum(acc_c_ref[...]) * inv_c
            bbox_loss = jnp.sum(acc_b_ref[...]) * inv_b
            total = class_loss + lam_ref[0] * bbox_loss
            lane = jax.lax.broadcasted_iota(jnp.int32, (1, _LANE), 1)
            out_ref[...] = jnp.where(
                lane == 0, total,
                jnp.where(lane == 1, class_loss,
                          jnp.where(lane == 2, bbox_loss, 0.0)))

    return kernel


def face_detection_loss(class_pred, class_target, bbox_pred, bbox_target,
                        lambda_reg=1.0, *, max_block_rows=_DEF_MAX_BLOCK_ROWS):
    """Pallas implementation of FaceDetectionLoss.forward.

    Returns (total_loss, class_loss, bbox_loss) as scalar f32 arrays.
    Wrap in jax.jit for production use (fuses the tiny layout ops).
    """
    n_cls = int(class_pred.size)
    n_box = int(bbox_pred.size)
    if n_cls == 0 or n_box == 0:
        raise ValueError("class/bbox tensors must be non-empty")

    max_rows = max(8, _round_up(int(max_block_rows), 8))
    f32 = jnp.float32

    # Class stream: pad pred with a large negative logit, target with 0
    # -> BCE contribution is exactly 0 in f32.
    cp2, ct2, trc, rows_c, nblk_c = _prep_stream(
        class_pred, class_target, max_rows, pad_pred=-1e4, pad_tgt=0.0)
    # Bbox stream: pad both with 0 -> SmoothL1 contribution is exactly 0.
    bp2, bt2, trb, rows_b, nblk_b = _prep_stream(
        bbox_pred, bbox_target, max_rows, pad_pred=0.0, pad_tgt=0.0)

    lam = jnp.asarray([lambda_reg], dtype=f32)                # (1,) SMEM scalar

    kernel = _make_kernel(n_cls, n_box, trc, trb, rows_c, rows_b,
                          nblk_c, nblk_b)

    # Region-aligned 1-D grid: class blocks [0, nblk_c), then bbox blocks.
    # Clamped index_maps keep the inactive stream's block resident (no refetch).
    cls_map = lambda i: (jnp.minimum(i, nblk_c - 1), 0)
    box_map = lambda i: (jnp.maximum(i - nblk_c, 0), 0)

    out = pl.pallas_call(
        kernel,
        out_shape=jax.ShapeDtypeStruct((1, _LANE), f32),
        grid=(nblk_c + nblk_b,),
        in_specs=[
            pl.BlockSpec(memory_space=pltpu.MemorySpace.SMEM),   # lambda_reg
            pl.BlockSpec((trc, _LANE), cls_map),                 # class pred
            pl.BlockSpec((trc, _LANE), cls_map),                 # class target
            pl.BlockSpec((trb, _LANE), box_map),                 # bbox pred
            pl.BlockSpec((trb, _LANE), box_map),                 # bbox target
        ],
        out_specs=pl.BlockSpec((1, _LANE), lambda i: (0, 0)),    # resident
        scratch_shapes=[
            pltpu.VMEM((8, _LANE), f32),   # class-loss partial sums (one vreg)
            pltpu.VMEM((8, _LANE), f32),   # bbox-loss partial sums (one vreg)
        ],
        compiler_params=pltpu.CompilerParams(
            dimension_semantics=("arbitrary",)),   # sequential reduction axis
    )(lam, cp2, ct2, bp2, bt2)

    return out[0, 0], out[0, 1], out[0, 2]


def _reference(class_pred, class_target, bbox_pred, bbox_target, lambda_reg=1.0):
    x = class_pred.astype(jnp.float32)
    y = class_target.astype(jnp.float32)
    bce = jnp.maximum(x, 0.0) - x * y + jnp.log1p(jnp.exp(-jnp.abs(x)))
    class_loss = jnp.mean(bce)
    d = bbox_pred.astype(jnp.float32) - bbox_target.astype(jnp.float32)
    ad = jnp.abs(d)
    sl1 = jnp.where(ad < 1.0, 0.5 * d * d, ad - 0.5)
    bbox_loss = jnp.mean(sl1)
    return class_loss + lambda_reg * bbox_loss, class_loss, bbox_loss


if __name__ == "__main__":
    key = jax.random.PRNGKey(0)
    k1, k2, k3, k4 = jax.random.split(key, 4)

    # Small shapes consistent with the module: [B,1] logits/labels, [B,4] boxes.
    B = 8
    class_pred = jax.random.normal(k1, (B, 1), dtype=jnp.float32)
    class_target = (jax.random.uniform(k2, (B, 1)) > 0.5).astype(jnp.float32)
    bbox_pred = jax.random.normal(k3, (B, 4), dtype=jnp.float32)
    bbox_target = jax.random.normal(k4, (B, 4), dtype=jnp.float32)

    total, cls, box = face_detection_loss(
        class_pred, class_target, bbox_pred, bbox_target, lambda_reg=1.0)
    jax.block_until_ready((total, cls, box))

    rt, rc, rb = _reference(class_pred, class_target, bbox_pred, bbox_target, 1.0)
    assert abs(float(total) - float(rt)) < 1e-5, (total, rt)
    assert abs(float(cls) - float(rc)) < 1e-5, (cls, rc)
    assert abs(float(box) - float(rb)) < 1e-5, (box, rb)

    # Extra validation: force the multi-block, region-aligned path with ragged
    # tails (small data, tiny block size) to verify the tail-block masking.
    k5, k6, k7, k8 = jax.random.split(jax.random.PRNGKey(1), 4)
    B2 = 300
    cp = jax.random.normal(k5, (B2, 1), dtype=jnp.float32)
    ct = (jax.random.uniform(k6, (B2, 1)) > 0.5).astype(jnp.float32)
    bp = jax.random.normal(k7, (B2, 4), dtype=jnp.float32)
    bt = jax.random.normal(k8, (B2, 4), dtype=jnp.float32)
    t2, c2, b2 = face_detection_loss(cp, ct, bp, bt, lambda_reg=0.5,
                                     max_block_rows=8)
    jax.block_until_ready((t2, c2, b2))
    rt2, rc2, rb2 = _reference(cp, ct, bp, bt, 0.5)
    assert abs(float(t2) - float(rt2)) < 1e-4, (t2, rt2)
    assert abs(float(c2) - float(rc2)) < 1e-4, (c2, rc2)
    assert abs(float(b2) - float(rb2)) < 1e-4, (b2, rb2)

    print("KERNEL_OK")
</pallas_src>

<mosaic_0001>
module attributes {stable_mosaic.version = 11 : i64} {
  func.func @kernel(%arg0: i32, %arg1: memref<1xf32, #tpu.memory_space<smem>>, %arg2: memref<8x128xf32, #tpu.memory_space<vmem>>, %arg3: memref<8x128xf32, #tpu.memory_space<vmem>>, %arg4: memref<8x128xf32, #tpu.memory_space<vmem>>, %arg5: memref<8x128xf32, #tpu.memory_space<vmem>>, %arg6: memref<1x128xf32, #tpu.memory_space<vmem>>, %arg7: memref<8x128xf32, #tpu.memory_space<vmem>>, %arg8: memref<8x128xf32, #tpu.memory_space<vmem>>) attributes {dimension_semantics = [#tpu.dimension_semantics<arbitrary>], iteration_bounds = array<i64: 2>, scalar_prefetch = 0 : i64, scratch_operands = 2 : i64, tpu.core_type = #tpu.core_type<tc>, window_params = [{transform_indices = @transform_0, window_bounds = array<i64: 1>}, {transform_indices = @transform_1, window_bounds = array<i64: 8, 128>}, {transform_indices = @transform_2, window_bounds = array<i64: 8, 128>}, {transform_indices = @transform_3, window_bounds = array<i64: 8, 128>}, {transform_indices = @transform_4, window_bounds = array<i64: 8, 128>}, {pipeline_mode = #tpu.pipeline_mode<synchronous>, transform_indices = @transform_5, window_bounds = array<i64: 1, 128>}]} {
    %c0_i32 = arith.constant 0 : i32
    %0 = arith.cmpi eq, %arg0, %c0_i32 : i32
    %1 = arith.extui %0 : i1 to i32
    %c0_i32_0 = arith.constant 0 : i32
    %2 = arith.cmpi ne, %1, %c0_i32_0 : i32
    scf.if %2 {
      %cst = arith.constant 0.000000e+00 : f32
      %12 = vector.broadcast %cst : f32 to vector<8x128xf32>
      %c0 = arith.constant 0 : index
      %c0_6 = arith.constant 0 : index
      %13 = vector.load %arg7[%c0, %c0_6] : memref<8x128xf32, #tpu.memory_space<vmem>>, vector<8x128xf32>
      tpu.vector_store %arg7[%c0, %c0_6], %12 {strides = array<i32>} : memref<8x128xf32, #tpu.memory_space<vmem>>, vector<8x128xf32>,
      %cst_7 = arith.constant 0.000000e+00 : f32
      %14 = vector.broadcast %cst_7 : f32 to vector<8x128xf32>
      %c0_8 = arith.constant 0 : index
      %c0_9 = arith.constant 0 : index
      %15 = vector.load %arg8[%c0_8, %c0_9] : memref<8x128xf32, #tpu.memory_space<vmem>>, vector<8x128xf32>
      tpu.vector_store %arg8[%c0_8, %c0_9], %14 {strides = array<i32>} : memref<8x128xf32, #tpu.memory_space<vmem>>, vector<8x128xf32>,
    } else {
    }
    %c1_i32 = arith.constant 1 : i32
    %3 = arith.cmpi slt, %arg0, %c1_i32 : i32
    %4 = arith.extui %3 : i1 to i32
    %c0_i32_1 = arith.constant 0 : i32
    %5 = arith.cmpi ne, %4, %c0_i32_1 : i32
    scf.if %5 {
      %c0 = arith.constant 0 : index
      %c0_6 = arith.constant 0 : index
      %12 = vector.load %arg2[%c0, %c0_6] : memref<8x128xf32, #tpu.memory_space<vmem>>, vector<8x128xf32>
      %c0_7 = arith.constant 0 : index
      %c0_8 = arith.constant 0 : index
      %13 = vector.load %arg3[%c0_7, %c0_8] : memref<8x128xf32, #tpu.memory_space<vmem>>, vector<8x128xf32>
      %cst = arith.constant 0.000000e+00 : f32
      %14 = vector.broadcast %cst : f32 to vector<8x128xf32>
      %15 = arith.maximumf %12, %14 : vector<8x128xf32>
      %16 = arith.mulf %12, %13 : vector<8x128xf32>
      %17 = arith.subf %15, %16 : vector<8x128xf32>
      %18 = math.absf %12 : vector<8x128xf32>
      %cst_9 = arith.constant 0.000000e+00 : f32
      %19 = vector.broadcast %cst_9 : f32 to vector<8x128xf32>
      %20 = arith.subf %19, %18 : vector<8x128xf32>
      %21 = math.exp %20 : vector<8x128xf32>
      %cst_10 = arith.constant 1.000000e+00 : f32
      %22 = vector.broadcast %cst_10 : f32 to vector<8x128xf32>
      %23 = arith.addf %22, %21 : vector<8x128xf32>
      %24 = math.log %23 : vector<8x128xf32>
      %25 = arith.addf %17, %24 : vector<8x128xf32>
      %26 = tpu.iota {dimensions = array<i32: 0>} : vector<8x128xi32>
      %c8_i32 = arith.constant 8 : i32
      %27 = arith.muli %arg0, %c8_i32 : i32
      %28 = vector.broadcast %27 : i32 to vector<8x128xi32>
      %29 = arith.addi %26, %28 : vector<8x128xi32>
      %c8_i32_11 = arith.constant 8 : i32
      %30 = vector.broadcast %c8_i32_11 : i32 to vector<8x128xi32>
      %31 = arith.cmpi slt, %29, %30 : vector<8x128xi32>
      %cst_12 = arith.constant 0.000000e+00 : f32
      %32 = vector.broadcast %cst_12 : f32 to vector<8x128xf32>
      %33 = arith.select %31, %25, %32 : vector<8x128xi1>, vector<8x128xf32>
      %c0_13 = arith.constant 0 : index
      %c0_14 = arith.constant 0 : index
      %34 = vector.load %arg7[%c0_13, %c0_14] : memref<8x128xf32, #tpu.memory_space<vmem>>, vector<8x128xf32>
      %35 = vector.shape_cast %33 : vector<8x128xf32> to vector<1x8x128xf32>
      %cst_15 = arith.constant dense<0.000000e+00> : vector<8x128xf32>
      %36 = vector.multi_reduction <add>, %35, %cst_15 [0] : vector<1x8x128xf32> to vector<8x128xf32>
      %37 = arith.addf %34, %36 : vector<8x128xf32>
      %c0_16 = arith.constant 0 : index
      %c0_17 = arith.constant 0 : index
      %38 = vector.load %arg7[%c0_16, %c0_17] : memref<8x128xf32, #tpu.memory_space<vmem>>, vector<8x128xf32>
      tpu.vector_store %arg7[%c0_16, %c0_17], %37 {strides = array<i32>} : memref<8x128xf32, #tpu.memory_space<vmem>>, vector<8x128xf32>,
    } else {
    }
    %c1_i32_2 = arith.constant 1 : i32
    %6 = arith.cmpi sge, %arg0, %c1_i32_2 : i32
    %7 = arith.extui %6 : i1 to i32
    %c0_i32_3 = arith.constant 0 : i32
    %8 = arith.cmpi ne, %7, %c0_i32_3 : i32
    scf.if %8 {
      %c0 = arith.constant 0 : index
      %c0_6 = arith.constant 0 : index
      %12 = vector.load %arg4[%c0, %c0_6] : memref<8x128xf32, #tpu.memory_space<vmem>>, vector<8x128xf32>
      %c0_7 = arith.constant 0 : index
      %c0_8 = arith.constant 0 : index
      %13 = vector.load %arg5[%c0_7, %c0_8] : memref<8x128xf32, #tpu.memory_space<vmem>>, vector<8x128xf32>
      %14 = arith.subf %12, %13 : vector<8x128xf32>
      %15 = math.absf %14 : vector<8x128xf32>
      %cst = arith.constant 1.000000e+00 : f32
      %16 = vector.broadcast %cst : f32 to vector<8x128xf32>
      %17 = arith.cmpf olt, %15, %16 : vector<8x128xf32>
      %cst_9 = arith.constant 5.000000e-01 : f32
      %18 = vector.broadcast %cst_9 : f32 to vector<8x128xf32>
      %19 = arith.mulf %18, %14 : vector<8x128xf32>
      %20 = arith.mulf %19, %14 : vector<8x128xf32>
      %cst_10 = arith.constant 5.000000e-01 : f32
      %21 = vector.broadcast %cst_10 : f32 to vector<8x128xf32>
      %22 = arith.subf %15, %21 : vector<8x128xf32>
      %23 = arith.select %17, %20, %22 : vector<8x128xi1>, vector<8x128xf32>
      %24 = tpu.iota {dimensions = array<i32: 0>} : vector<8x128xi32>
      %c1_i32_11 = arith.constant 1 : i32
      %25 = arith.subi %arg0, %c1_i32_11 : i32
      %c8_i32 = arith.constant 8 : i32
      %26 = arith.muli %25, %c8_i32 : i32
      %27 = vector.broadcast %26 : i32 to vector<8x128xi32>
      %28 = arith.addi %24, %27 : vector<8x128xi32>
      %c8_i32_12 = arith.constant 8 : i32
      %29 = vector.broadcast %c8_i32_12 : i32 to vector<8x128xi32>
      %30 = arith.cmpi slt, %28, %29 : vector<8x128xi32>
      %cst_13 = arith.constant 0.000000e+00 : f32
      %31 = vector.broadcast %cst_13 : f32 to vector<8x128xf32>
      %32 = arith.select %30, %23, %31 : vector<8x128xi1>, vector<8x128xf32>
      %c0_14 = arith.constant 0 : index
      %c0_15 = arith.constant 0 : index
      %33 = vector.load %arg8[%c0_14, %c0_15] : memref<8x128xf32, #tpu.memory_space<vmem>>, vector<8x128xf32>
      %34 = vector.shape_cast %32 : vector<8x128xf32> to vector<1x8x128xf32>
      %cst_16 = arith.constant dense<0.000000e+00> : vector<8x128xf32>
      %35 = vector.multi_reduction <add>, %34, %cst_16 [0] : vector<1x8x128xf32> to vector<8x128xf32>
      %36 = arith.addf %33, %35 : vector<8x128xf32>
      %c0_17 = arith.constant 0 : index
      %c0_18 = arith.constant 0 : index
      %37 = vector.load %arg8[%c0_17, %c0_18] : memref<8x128xf32, #tpu.memory_space<vmem>>, vector<8x128xf32>
      tpu.vector_store %arg8[%c0_17, %c0_18], %36 {strides = array<i32>} : memref<8x128xf32, #tpu.memory_space<vmem>>, vector<8x128xf32>,
    } else {
    }
    %c1_i32_4 = arith.constant 1 : i32
    %9 = arith.cmpi eq, %arg0, %c1_i32_4 : i32
    %10 = arith.extui %9 : i1 to i32
    %c0_i32_5 = arith.constant 0 : i32
    %11 = arith.cmpi ne, %10, %c0_i32_5 : i32
    scf.if %11 {
      %c0 = arith.constant 0 : index
      %c0_6 = arith.constant 0 : index
      %12 = vector.load %arg7[%c0, %c0_6] : memref<8x128xf32, #tpu.memory_space<vmem>>, vector<8x128xf32>
      %13 = vector.shape_cast %12 : vector<8x128xf32> to vector<1x8x128xf32>
      %cst = arith.constant dense<0.000000e+00> : vector<1xf32>
      %14 = vector.multi_reduction <add>, %13, %cst [1, 2] : vector<1x8x128xf32> to vector<1xf32>
      %15 = vector.shape_cast %14 : vector<1xf32> to vector<1x1x1xf32>
      %16 = vector.extract %15[0, 0, 0] : f32 from vector<1x1x1xf32>
      %cst_7 = arith.constant 1.250000e-01 : f32
      %17 = arith.mulf %16, %cst_7 : f32
      %c0_8 = arith.constant 0 : index
      %c0_9 = arith.constant 0 : index
      %18 = vector.load %arg8[%c0_8, %c0_9] : memref<8x128xf32, #tpu.memory_space<vmem>>, vector<8x128xf32>
      %19 = vector.shape_cast %18 : vector<8x128xf32> to vector<1x8x128xf32>
      %cst_10 = arith.constant dense<0.000000e+00> : vector<1xf32>
      %20 = vector.multi_reduction <add>, %19, %cst_10 [1, 2] : vector<1x8x128xf32> to vector<1xf32>
      %21 = vector.shape_cast %20 : vector<1xf32> to vector<1x1x1xf32>
      %22 = vector.extract %21[0, 0, 0] : f32 from vector<1x1x1xf32>
      %cst_11 = arith.constant 3.125000e-02 : f32
      %23 = arith.mulf %22, %cst_11 : f32
      %c0_12 = arith.constant 0 : index
      %24 = memref.load %arg1[%c0_12] : memref<1xf32, #tpu.memory_space<smem>>
      %25 = arith.mulf %24, %23 : f32
      %26 = arith.addf %17, %25 : f32
      %27 = tpu.iota {dimensions = array<i32: 1>} : vector<1x128xi32>
      %c0_i32_13 = arith.constant 0 : i32
      %28 = vector.broadcast %c0_i32_13 : i32 to vector<1x128xi32>
      %29 = arith.cmpi eq, %27, %28 : vector<1x128xi32>
      %c1_i32_14 = arith.constant 1 : i32
      %30 = vector.broadcast %c1_i32_14 : i32 to vector<1x128xi32>
      %31 = arith.cmpi eq, %27, %30 : vector<1x128xi32>
      %c2_i32 = arith.constant 2 : i32
      %32 = vector.broadcast %c2_i32 : i32 to vector<1x128xi32>
      %33 = arith.cmpi eq, %27, %32 : vector<1x128xi32>
      %cst_15 = arith.constant 0.000000e+00 : f32
      %34 = vector.broadcast %23 : f32 to vector<1x128xf32>
      %35 = vector.broadcast %cst_15 : f32 to vector<1x128xf32>
      %36 = arith.select %33, %34, %35 : vector<1x128xi1>, vector<1x128xf32>
      %37 = vector.broadcast %17 : f32 to vector<1x128xf32>
      %38 = arith.select %31, %37, %36 : vector<1x128xi1>, vector<1x128xf32>
      %39 = vector.broadcast %26 : f32 to vector<1x128xf32>
      %40 = arith.select %29, %39, %38 : vector<1x128xi1>, vector<1x128xf32>
      %c0_16 = arith.constant 0 : index
      %c0_17 = arith.constant 0 : index
      %41 = vector.load %arg6[%c0_16, %c0_17] : memref<1x128xf32, #tpu.memory_space<vmem>>, vector<1x128xf32>
      tpu.vector_store %arg6[%c0_16, %c0_17], %40 {strides = array<i32>} : memref<1x128xf32, #tpu.memory_space<vmem>>, vector<1x128xf32>,
    } else {
    }
    return
  }
  func.func @transform_0(%arg0: i32) -> i32 {
    %c0_i32 = arith.constant 0 : i32
    %c0_i32_0 = arith.constant 0 : i32
    return %c0_i32 : i32
  }
  func.func @transform_1(%arg0: i32) -> (i32, i32) {
    %c0_i32 = arith.constant 0 : i32
    %0 = arith.minsi %arg0, %c0_i32 : i32
    %c0_i32_0 = arith.constant 0 : i32
    %c0_i32_1 = arith.constant 0 : i32
    return %0, %c0_i32_0 : i32, i32
  }
  func.func @transform_2(%arg0: i32) -> (i32, i32) {
    %c0_i32 = arith.constant 0 : i32
    %0 = arith.minsi %arg0, %c0_i32 : i32
    %c0_i32_0 = arith.constant 0 : i32
    %c0_i32_1 = arith.constant 0 : i32
    return %0, %c0_i32_0 : i32, i32
  }
  func.func @transform_3(%arg0: i32) -> (i32, i32) {
    %c1_i32 = arith.constant 1 : i32
    %0 = arith.subi %arg0, %c1_i32 : i32
    %c0_i32 = arith.constant 0 : i32
    %1 = arith.maxsi %0, %c0_i32 : i32
    %c0_i32_0 = arith.constant 0 : i32
    %c0_i32_1 = arith.constant 0 : i32
    return %1, %c0_i32_0 : i32, i32
  }
  func.func @transform_4(%arg0: i32) -> (i32, i32) {
    %c1_i32 = arith.constant 1 : i32
    %0 = arith.subi %arg0, %c1_i32 : i32
    %c0_i32 = arith.constant 0 : i32
    %1 = arith.maxsi %0, %c0_i32 : i32
    %c0_i32_0 = arith.constant 0 : i32
    %c0_i32_1 = arith.constant 0 : i32
    return %1, %c0_i32_0 : i32, i32
  }
  func.func @transform_5(%arg0: i32) -> (i32, i32) {
    %c0_i32 = arith.constant 0 : i32
    %c0_i32_0 = arith.constant 0 : i32
    %c0_i32_1 = arith.constant 0 : i32
    return %c0_i32, %c0_i32_0 : i32, i32
  }
}

</mosaic_0001>

<bundles_post_ra>
// kernel: tpu_custom_call.1
= control target key start
LH: loop header
LB: loop body
LE: loop exit
PB: predicated region body
PF: predicated region fallthrough
CT: control target
= control target key end

     0   :  { %s1227_s0 = inlined_call_operand.<no memory space> [shape: f32[1], index: 0, kind: input, shape index: {}]   ;;  %s1228_s1 = inlined_call_operand.hbm [shape: f32[8,128], index: 1, kind: input, shape index: {}]   ;;  %s1229_s2 = inlined_call_operand.hbm [shape: f32[8,128], index: 2, kind: input, shape index: {}]   ;;  %s1230_s3 = inlined_call_operand.vmem [shape: f32[8,128], index: 3, kind: input, shape index: {}]   ;;  %s1231_s4 = inlined_call_operand.hbm [shape: f32[8,128], index: 4, kind: input, shape index: {}]   ;;  %s1232_s5 = inlined_call_operand.hbm [shape: f32[1,128], index: 5, kind: output, shape index: {}]  }
   0x1   :  { %10 = sst [smem:[#allocation4]] %s1227_s0 }
   0x2   :  { %11 = vsyncpa [#allocation6], 0 }
   0x3   :  { %13 = vsyncpa [#allocation6 + $0x1], 0 }
   0x4   :  { %14 = vsyncpa [#allocation9], 0 }
   0x5   :  { %16 = vsyncpa [#allocation9 + $0x1], 0 }
   0x6   :  { %17 = vsyncpa [#allocation7], 0  ;;  %s930_s20 = smov 0   ;;  %s932_s21 = smov 0  }
   0x7   :  { %s934_s22 = smov 0   ;;  %s936_s23 = smov 0  }
   0x8   :  { %s938_s24 = smov 0   ;;  %s940_s25 = smov 0  }
   0x9   :  { %s942_s26 = smov 0  }
   0xa LB: > { %s966_s0 = sadd.s32 1, %s890_s26   ;;  %p48_p0 = scmp.lt.s32.totalorder %s890_s26, 0  ;;  %s890_s26 = sphi %s942_s26, %s1252_s26   ;;  %s886_s25 = sphi %s940_s25, %s1251_s25   ;;  %s882_s24 = sphi %s938_s24, %s1250_s24   ;;  %s878_s23 = sphi %s936_s23, %s1249_s23   ;;  %s874_s22 = sphi %s934_s22, %s1248_s22   ;;  %s870_s21 = sphi %s932_s21, %s1247_s21   ;;  %s866_s20 = sphi %s930_s20, %s1246_s20  }
   0xb   : > { %p50_p1 = scmp.lt.s32.totalorder %s966_s0, 0  ;;  %s55_s27 = sadd.s32 1, %s886_s25 }
   0xc   : > { %s972_s28 = scalar_select %p48_p0, %s890_s26, 0 }
   0xd   : > { %s51_s29 = scalar_select %p50_p1, %s966_s0, 0 }
   0xe   : > { %p62_p2 = scmp.ne.s32.totalorder %s886_s25, %s882_s24  ;;  %p1234_p3 = scmp.eq.s32.totalorder %s890_s26, 0 }
   0xf   : > { %s52_s30 = ssub.s32 %s972_s28, %s51_s29  ;;  %p1233_p7 = scmp.lt.s32.totalorder %s890_s26, 2 }
  0x10   : > { %p53_p5 = scmp.eq.s32.totalorder %s52_s30, 0  ;;  %p64_p6 = por %p1234_p3, %p62_p2 }
  0x11   : > { %s210_s7 = sand.u32 1, %s886_s25   ;;  %s586_s8 = sshll.u32 %s972_s28, 7 }
  0x12   : > { %s985_s6 = scalar_select %p53_p5, %s886_s25, %s55_s27  }
  0x13   : > { %s991_s9 = sshll.u32 %s210_s7, 3  ;;  %p995_p8 = pnand %p1233_p7, %p64_p6 }
  0x14   : > { %s230_s11 = sand.u32 1, %s890_s26   ;;  %s1005_s14 = scalar_lea.hbm %s1229_s2, %s586_s8 }
  0x15   : > { %s234_s15 = scalar_lea.vmem [#allocation8], %s991_s9  ;;  %p592_p9 = scmp.ge.s32.totalorder %s890_s26, 1 }
  0x16   : > { %s243_s16 = sshll.u32 %s234_s15, 4  ;;  %s1011_s17 = scalar_lea.sflag [#allocation9], %s230_s11  ;;  %s1008_s16 = int_to_ptr.vmem [resolvable:$true] %s243_s16 }
  0x17   : > { %s704_s18 = scalar_lea.hbm %s1005_s14, 128  ;;  %p706_p11 = pneg %p995_p8 }
  0x18   : > { %p705_p10 = scmp.ne.s32.totalorder %s1005_s14, %s704_s18  ;;  %s709_s29 = scalar_lea.hbm %s1229_s2, 128 }
  0x19   : > { %p710_p0 = scmp.lt.u32.totalorder %s1005_s14, %s1229_s2  ;;  %p711_p1 = scmp.lt.u32.totalorder %s709_s29, %s704_s18 }
  0x1a   : > { %p707_p12 = pnand %p706_p11, %p705_p10  ;;  %p713_p5 = scmp.lt.u32.totalorder %s704_s18, %s1005_s14 }
  0x1b   : > { %p712_p2 = por %p711_p1, %p710_p0 }
  0x1c   : > { %p708_p13 = pneg %p707_p12 }
  0x1d   : > { %p714_p6 = por %p713_p5, %p712_p2 }
  0x1f   : > { %p715_p7 = pnand %p714_p6, %p708_p13 }
  0x21   : > { %718 = shalt.err (!%p715_p7)
}
  0x22   : > { %s719_s11 = scalar_lea.vmem %s1008_s16, 128  ;;  %s892_s13 = smov [#allocation8]  }
  0x23   : > { %p720_p10 = scmp.ne.s32.totalorder %s1008_s16, %s719_s11  ;;  %s724_s15 = sshll.u32 %s892_s13, 4  ;;  %s725_s15 = int_to_ptr.vmem [resolvable:$false] %s724_s15 }
  0x24   : > { %s726_s19 = scalar_lea.vmem %s725_s15, 256  ;;  %p727_p4 = scmp.lt.s32.totalorder %s1008_s16, %s725_s15 }
  0x25   : > { %p722_p12 = pnand %p720_p10, %p706_p11  ;;  %p728_p0 = scmp.lt.s32.totalorder %s726_s19, %s719_s11 }
  0x27   : > { %p723_p3 = pneg %p722_p12  ;;  %p729_p1 = por %p728_p0, %p727_p4 }
  0x29   : > { %p730_p2 = pnand %p729_p1, %p723_p3 }
  0x2b   : > { %733 = shalt.err (!%p730_p2)
}
  0x2c   : > { %635 = dma.hbm_to_vmem [thread:$0]  (!%p995_p8), %s1005_s14, 128, %s1008_s16, %s1011_s17  }
  0x2d   : > { %p282_p7 = scmp.lt.s32.totalorder %s890_s26, 3  ;;  %s1045_s29 = scalar_lea.hbm %s1228_s1, %s586_s8 }
  0x2e   : > { %s214_s12 = scalar_lea.vmem [#allocation5], %s991_s9  ;;  %s211_s14 = scalar_lea.sflag [#allocation6], %s210_s7 }
  0x2f   : > { %p1049_p3 = pnand %p592_p9, %p282_p7  ;;  %s223_s11 = sshll.u32 %s214_s12, 4  ;;  %s224_s11 = int_to_ptr.vmem [resolvable:$true] %s223_s11 }
  0x30   : > { %s734_s28 = scalar_lea.hbm %s1045_s29, 128  ;;  %s739_s13 = scalar_lea.hbm %s1228_s1, 128 }
  0x31   : > { %s1237_s30 = scalar_select %p1049_p3, 1, 0 }
  0x32   : > { %p735_p4 = scmp.ne.s32.totalorder %s1045_s29, %s734_s28  ;;  %p740_p9 = scmp.lt.u32.totalorder %s1045_s29, %s1228_s1 }
  0x33   : > { %p741_p6 = scmp.lt.u32.totalorder %s739_s13, %s734_s28  ;;  %p743_p12 = scmp.lt.u32.totalorder %s734_s28, %s1045_s29 }
  0x34   : > { %p737_p13 = pnand %p735_p4, %p706_p11 }
  0x35   : > { %p742_p10 = por %p741_p6, %p740_p9 }
  0x36   : > { %p738_p5 = pneg %p737_p13 }
  0x37   : > { %p744_p0 = por %p743_p12, %p742_p10 }
  0x39   : > { %p745_p1 = pnand %p744_p0, %p738_p5 }
  0x3b   : > { %748 = shalt.err (!%p745_p1)
}
  0x3c   : > { %s749_s7 = scalar_lea.vmem %s224_s11, 128  ;;  %s893_s9 = smov [#allocation5]  }
  0x3d   : > { %p750_p2 = scmp.ne.s32.totalorder %s224_s11, %s749_s7  ;;  %s754_s18 = sshll.u32 %s893_s9, 4  ;;  %s755_s18 = int_to_ptr.vmem [resolvable:$false] %s754_s18 }
  0x3e   : > { %s756_s27 = scalar_lea.vmem %s755_s18, 256  ;;  %p757_p13 = scmp.lt.s32.totalorder %s224_s11, %s755_s18 }
  0x3f   : > { %p752_p7 = pnand %p750_p2, %p706_p11  ;;  %p758_p3 = scmp.lt.s32.totalorder %s756_s27, %s749_s7 }
  0x41   : > { %p753_p4 = pneg %p752_p7  ;;  %p759_p6 = por %p758_p3, %p757_p13 }
  0x43   : > { %p760_p9 = pnand %p759_p6, %p753_p4 }
  0x45   : > { %763 = shalt.err (!%p760_p9)
}
  0x46   : > { %632 = dma.hbm_to_vmem [thread:$0]  (!%p995_p8), %s1045_s29, 128, %s224_s11, %s211_s14  }
  0x47   : > { %s1076_s12 = sadd.s32 4294967295, %s890_s26   ;;  %s582_s10 = sadd.s32 4294967295, %s966_s0 }
  0x48   : > { %p69_p11 = scmp.eq.s32.totalorder %s1076_s12, 0  ;;  %p141_p3 = scmp.gt.s32.totalorder %s1076_s12, 0 }
  0x49   : > { %s149_s28 = sadd.s32 1, %s874_s22  ;;  %p1238_p5 = scmp.ne.s32.totalorder %s882_s24, %s878_s23 }
  0x4a   : > { %p144_p12 = scmp.gt.s32.totalorder %s582_s10, 0  ;;  %p156_p8 = scmp.ne.s32.totalorder %s874_s22, %s870_s21 }
  0x4b   : > { %p1087_p10 = por %p69_p11, %p1238_p5  ;;  %p162_p0 = scmp.ne.s32.totalorder %s870_s21, %s866_s20 }
  0x4c   : > { %s142_s29 = scalar_select %p141_p3, %s1076_s12, 0 }
  0x4d   : > { %s1254_s10 = smov (!%p144_p12, %s582_s10), 0  ;;  %s265_s14 = sand.u32 1, %s874_s22  }
  0x4e   : > { %s146_s11 = ssub.s32 %s142_s29, %s1254_s10  ;;  %p1240_p2 = scmp.eq.s32.totalorder %s890_s26, 0 }
  0x4f   : > { %p147_p1 = scmp.eq.s32.totalorder %s146_s11, 0  ;;  %p1101_p4 = por %p162_p0, %p69_p11 }
  0x50   : > { %p158_p7 = por %p156_p8, %p1240_p2  ;;  %s589_s23 = sshll.u32 %s265_s14, 3 }
  0x51   : > { %s1241_s16 = scalar_select %p1101_p4, 1, 0 }
  0x52   : > { %s1106_s13 = scalar_select %p147_p1, %s874_s22, %s149_s28  }
  0x53   : > { %s591_s15 = sshll.u32 %s142_s29, 7  ;;  %s267_s20 = scalar_lea.vmem [#allocation10], %s589_s23 }
  0x54   : > { %s1111_s9 = scalar_lea.hbm %s1231_s4, %s591_s15  ;;  %s277_s18 = sshll.u32 %s267_s20, 4  ;;  %s1113_s18 = int_to_ptr.vmem [resolvable:$true] %s277_s18 }
  0x55   : > { %p1242_p13 = scmp.lt.s32.totalorder %s890_s26, 2  ;;  %s764_s10 = scalar_lea.hbm %s1111_s9, 128 }
  0x56   : > { %p765_p9 = scmp.ne.s32.totalorder %s1111_s9, %s764_s10  ;;  %s769_s11 = scalar_lea.hbm %s1231_s4, 128 }
  0x57   : > { %p1117_p6 = pnand %p1242_p13, %p158_p7  ;;  %p770_p12 = scmp.lt.u32.totalorder %s1111_s9, %s1231_s4 }
  0x58   : > { %p771_p8 = scmp.lt.u32.totalorder %s769_s11, %s764_s10  ;;  %p773_p1 = scmp.lt.u32.totalorder %s764_s10, %s1111_s9 }
  0x59   : > { %p766_p11 = pneg %p1117_p6 }
  0x5a   : > { %p772_p0 = por %p771_p8, %p770_p12 }
  0x5b   : > { %p767_p3 = pnand %p766_p11, %p765_p9 }
  0x5c   : > { %p774_p2 = por %p773_p1, %p772_p0 }
  0x5d   : > { %p768_p5 = pneg %p767_p3 }
  0x5f   : > { %p775_p7 = pnand %p774_p2, %p768_p5 }
  0x61   : > { %778 = shalt.err (!%p775_p7)
}
  0x62   : > { %s779_s23 = scalar_lea.vmem %s1113_s18, 128  ;;  %s894_s15 = smov [#allocation10]  }
  0x63   : > { %p780_p13 = scmp.ne.s32.totalorder %s1113_s18, %s779_s23  ;;  %s784_s19 = sshll.u32 %s894_s15, 4  ;;  %s785_s19 = int_to_ptr.vmem [resolvable:$false] %s784_s19 }
  0x64   : > { %s786_s7 = scalar_lea.vmem %s785_s19, 256  ;;  %p787_p4 = scmp.lt.s32.totalorder %s1113_s18, %s785_s19 }
  0x65   : > { %p782_p9 = pnand %p780_p13, %p766_p11  ;;  %p788_p12 = scmp.lt.s32.totalorder %s786_s7, %s779_s23 }
  0x67   : > { %p783_p3 = pneg %p782_p9  ;;  %p789_p8 = por %p788_p12, %p787_p4 }
  0x69   : > { %p790_p0 = pnand %p789_p8, %p783_p3 }
  0x6b   : > { %793 = shalt.err (!%p790_p0)
}
  0x6c   : > { %638 = dma.hbm_to_vmem [thread:$0]  (!%p1117_p6), %s1111_s9, 128, %s1113_s18, %s1011_s17  }
  0x6d   : > { %p1244_p5 = scmp.ne.s32.totalorder %s1237_s30, 0 }
  0x6e   : > { %s288_s20 = sand.u32 (!%p1244_p5), 1, %s882_s24  }
  0x6f   : > { %286 = sbr.rel (%p1244_p5) target bundleno = 433 (0x1b1), region = 40  ;;  %s1150_s10 = sshll.u32 (!%p1244_p5), %s288_s20, 3 }
  0x70   : > { %s289_s28 = scalar_lea.sflag (!%p1244_p5), [#allocation6], %s288_s20  ;;  %s292_s29 = scalar_lea.vmem (!%p1244_p5), [#allocation5], %s1150_s10 }
  0x76   : > { %849 = dma.done.wait (%p1087_p10), %s289_s28, 128  }
  0x77   : > { %851 = vsyncadd (%p1087_p10), %s289_s28, 4294967168  ;;  %s297_s17 = sand.u32 1, %s1076_s12   ;;  %s301_s30 = scalar_lea.vmem [#allocation8], %s1150_s10 }
  0x78   : > { %s298_s9 = scalar_lea.sflag [#allocation9], %s297_s17 }
  0x79   : > { %853 = dma.done.wait (%p1087_p10), %s298_s9, 128  }
  0x7a   : > { %855 = vsyncadd (%p1087_p10), %s298_s9, 4294967168  ;;  %s308_s18 = sand.u32 1, %s870_s21   ;;  %p1245_p4 = scmp.ne.s32.totalorder %s1241_s16, 0 }
  0x7b   : > { %s1164_s27 = sshll.u32 %s308_s18, 3 }
  0x7c   : > { %s310_s11 = scalar_lea.vmem [#allocation10], %s1164_s27 }
  0x7d   : > { %857 = dma.done.wait (%p1245_p4), %s298_s9, 128  }
  0x7e   : > { %859 = vsyncadd (%p1245_p4), %s298_s9, 4294967168  ;;  %p603_p6 = scmp.ne.s32.totalorder %s1076_s12, 0 }
  0x7f   : > { %v895_v0 = vmov (!%p603_p6), 0.0  }
  0x80   : > { %369 = sbr.rel (%p603_p6) target bundleno = 135 (0x87), region = 56  ;;  %370 = vst [vmem:[#allocation2] sm:$0xff] (!%p603_p6), %v895_v0  ;;  %371 = vst [vmem:[#allocation3] sm:$0xff] (!%p603_p6), %v895_v0 }
  0x87 PF: > { %p604_p10 = scmp.ge.s32.totalorder %s1076_s12, 1 }
  0x88   : > { %v376_v1 = vld [vmem:[%s292_s29] sm:$0xff] (!%p604_p10)  ;;  %v389_v7 = vlaneseq (!%p604_p10)  ;;  %v377_v8 = vld [vmem:[%s301_s30] sm:$0xff] (!%p604_p10)  ;;  %s605_s8 = sshll.u32 (!%p604_p10), %s1076_s12, 3 }
  0x89   : > { %375 = sbr.rel (%p604_p10) target bundleno = 175 (0xaf), region = 60  ;;  %v381_v2 = vand.u32 (!%p604_p10), 2147483647, %v376_v1  ;;  %v378_v10 = vmax.f32 (!%p604_p10), %v376_v1, 0.0  ;;  %v379_v11 = vmul.f32 (!%p604_p10), %v377_v8, %v376_v1  ;;  %v392_v12 = vstv (!%p604_p10), %s605_s8  ;;  %v396_v18 = vld [vmem:[#allocation2] sm:$0xff] (!%p604_p10) }
  0x8a   : > { %v390_v9 = vshrl.u32 (!%p604_p10), %v389_v7, 7 }
  0x8b   : > { %v382_v3 = vsub.f32 (!%p604_p10), 0.0, %v381_v2  ;;  %v380_v14 = vsub.f32 (!%p604_p10), %v378_v10, %v379_v11 }
  0x8c   : > { %v393_v13 = vadd.s32 (!%p604_p10), %v392_v12, %v390_v9 }
  0x8d   : > { %v383_v4 = vmul.f32 (!%p604_p10), 1.442695, %v382_v3 }
  0x8e   : > { %vm394_vm0 = vcmp.lt.s32.totalorder (!%p604_p10), %v393_v13, 8 }
  0x8f   : > { %700 = vpow2.f32 (!%p604_p10), %v383_v4 }
  0x99   : > { %v701_v5 = vpop.eup %700 }
  0x9a   : > { %v385_v6 = vadd.f32 1.0, %v701_v5 }
  0x9c   : > { %702 = vlog2.f32 %v385_v6 }
  0xa6   : > { %v703_v15 = vpop.eup %702 }
  0xa7   : > { %v387_v16 = vmul.f32 0.6931472, %v703_v15 }
  0xa9   : > { %v388_v17 = vadd.f32 %v387_v16, %v380_v14 }
  0xab   : > { %v395_v19 = vsel %vm394_vm0, %v388_v17, 0.0 }
  0xac   : > { %v398_v20 = vadd.f32 %v396_v18, %v395_v19 }
  0xae   : > { %399 = vst [vmem:[#allocation2] sm:$0xff] %v398_v20 }
  0xaf PF: > { %p606_p11 = scmp.lt.s32.totalorder %s1076_s12, 1 }
  0xb0   : > { %v404_v21 = vld [vmem:[%s1230_s3] sm:$0xff] (!%p606_p11)  ;;  %v405_v22 = vld [vmem:[%s310_s11] sm:$0xff] (!%p606_p11)  ;;  %v413_v23 = vlaneseq (!%p606_p11)  ;;  %s608_s26 = sadd.s32 (!%p606_p11), 4294967295, %s1076_s12  ;;  %v421_v32 = vld [vmem:[#allocation3] sm:$0xff] (!%p606_p11) }
  0xb1   : > { %403 = sbr.rel (%p606_p11) target bundleno = 188 (0xbc), region = 64  ;;  %v406_v24 = vsub.f32 (!%p606_p11), %v404_v21, %v405_v22  ;;  %s609_s23 = sshll.u32 (!%p606_p11), %s608_s26, 3 }
  0xb2   : > { %v414_v25 = vshrl.u32 (!%p606_p11), %v413_v23, 7  ;;  %v417_v26 = vstv (!%p606_p11), %s609_s23 }
  0xb3   : > { %v407_v27 = vand.u32 (!%p606_p11), 2147483647, %v406_v24  ;;  %v409_v28 = vmul.f32 (!%p606_p11), 0.5, %v406_v24 }
  0xb4   : > { %v418_v29 = vadd.s32 (!%p606_p11), %v417_v26, %v414_v25 }
  0xb5   : > { %vm408_vm1 = vcmp.lt.f32.partialorder (!%p606_p11), %v407_v27, 1.0  ;;  %v410_v30 = vmul.f32 (!%p606_p11), %v409_v28, %v406_v24  ;;  %v607_v31 = vadd.f32 (!%p606_p11), -0.5, %v407_v27 }
  0xb6   : > { %vm419_vm2 = vcmp.lt.s32.totalorder (!%p606_p11), %v418_v29, 8 }
  0xb7   : > { %v412_v33 = vsel (!%p606_p11), %vm408_vm1, %v410_v30, %v607_v31 }
  0xb8   : > { %v420_v34 = vsel %vm419_vm2, %v412_v33, 0.0 }
  0xb9   : > { %v423_v35 = vadd.f32 %v421_v32, %v420_v34 }
  0xbb   : > { %424 = vst [vmem:[#allocation3] sm:$0xff] %v423_v35 }
  0xbc PF: > { %p610_p1 = scmp.ne.s32.totalorder %s1076_s12, 1 }
  0xbd   : > { %v429_v36 = vld [vmem:[#allocation2] sm:$0xff] (!%p610_p1)  ;;  %v454_v52 = vlaneseq (!%p610_p1)  ;;  %s451_s15 = sld [smem:[#allocation4]] (!%p610_p1) }
  0xbe   : > { %428 = sbr.rel (%p610_p1) target bundleno = 408 (0x198), region = 68  ;;  %430 = vadd.xlane.f32.xlu0 (!%p610_p1), %v429_v36 }
  0xbf   : > { %v455_v53 = vand.u32 (!%p610_p1), 127, %v454_v52 }
  0xc1   : > { %vm458_vm3 = vcmp.eq.s32.totalorder (!%p610_p1), %v455_v53, 2  ;;  %vm457_vm4 = vcmp.eq.s32.totalorder (!%p610_p1), %v455_v53, 1  ;;  %vm456_vm5 = vcmp.eq.s32.totalorder (!%p610_p1), %v455_v53, 0 }
  0xc2   : > { %v440_v37 = vld [vmem:[#allocation3] sm:$0xff] (!%p610_p1) }
  0xc3   : > { %441 = vadd.xlane.f32.xlu0 (!%p610_p1), %v440_v37 }
 0x14b   : > { %v431_v38 = vpop.xlane.xlu0 %430 }
 0x14c   : > { %v432_v39 = vrot.slane %v431_v38, 4 }
 0x14e   : > { %v433_v40 = vadd.f32 %v432_v39, %v431_v38 }
 0x150   : > { %v442_v41 = vpop.xlane.xlu0 %441  ;;  %v434_v42 = vrot.slane %v433_v40, 2 }
 0x151   : > { %v443_v43 = vrot.slane %v442_v41, 4 }
 0x152   : > { %v435_v45 = vadd.f32 %v434_v42, %v433_v40 }
 0x153   : > { %v444_v44 = vadd.f32 %v443_v43, %v442_v41 }
 0x154   : > { %v436_v47 = vrot.slane %v435_v45, 1 }
 0x155   : > { %v445_v46 = vrot.slane %v444_v44, 2 }
 0x156   : > { %v437_v49 = vadd.f32 %v436_v47, %v435_v45 }
 0x157   : > { %v446_v48 = vadd.f32 %v445_v46, %v444_v44 }
 0x158   : > { %615 = vpush %v437_v49 }
 0x159   : > { %v447_v50 = vrot.slane %v446_v48, 1 }
 0x15b   : > { %v448_v51 = vadd.f32 %v447_v50, %v446_v48 }
 0x15d   : > { %617 = vpush %v448_v51 }
 0x189   : > { %s616_s19 = spop %615 }
 0x18a   : > { %s439_s10 = smul.f32 0.125, %s616_s19 }
 0x18c   : > { %v461_v56 = vstv %s439_s10 }
 0x18e   : > { %s618_s7 = spop %617 }
 0x18f   : > { %s450_s20 = smul.f32 0.03125, %s618_s7 }
 0x191   : > { %s452_s28 = smul.f32 %s451_s15, %s450_s20  ;;  %v459_v54 = vstv %s450_s20 }
 0x192   : > { %v460_v55 = vsel %vm458_vm3, %v459_v54, 0.0 }
 0x193   : > { %s453_s29 = sadd.f32 %s452_s28, %s439_s10  ;;  %v462_v57 = vsel %vm457_vm4, %v461_v56, %v460_v55 }
 0x195   : > { %v463_v58 = vstv %s453_s29 }
 0x196   : > { %v464_v59 = vsel %vm456_vm5, %v463_v58, %v462_v57 }
 0x197   : > { %465 = vst [vmem:[#allocation11] sm:$0x1] %v464_v59 }
 0x198 PF: > { %p640_p2 = scmp.eq.s32.totalorder %s1076_s12, 1  ;;  %s896_s17 = smov [#allocation11]  }
 0x199   : > { %s473_s9 = sshll.u32 %s896_s17, 4  ;;  %s474_s9 = int_to_ptr.vmem [resolvable:$true] %s473_s9 }
 0x19a   : > { %s794_s30 = scalar_lea.vmem %s474_s9, 16  ;;  %s800_s18 = scalar_lea.vmem %s474_s9, 32 }
 0x19b   : > { %p795_p7 = scmp.ne.s32.totalorder %s474_s9, %s794_s30  ;;  %p801_p3 = scmp.lt.s32.totalorder %s474_s9, %s474_s9 }
 0x19c   : > { %p802_p12 = scmp.lt.s32.totalorder %s800_s18, %s794_s30 }
 0x19d   : > { %p796_p13 = pnand %p795_p7, %p640_p2 }
 0x19e   : > { %p803_p8 = por %p802_p12, %p801_p3 }
 0x19f   : > { %p797_p9 = pneg %p796_p13 }
 0x1a1   : > { %p804_p0 = pnand %p803_p8, %p797_p9 }
 0x1a3   : > { %807 = shalt.err (!%p804_p0)
}
 0x1a4   : > { %s808_s8 = scalar_lea.hbm %s1232_s5, 16 }
 0x1a5   : > { %p809_p5 = scmp.ne.s32.totalorder %s1232_s5, %s808_s8  ;;  %p814_p10 = scmp.lt.u32.totalorder %s808_s8, %s1232_s5 }
 0x1a7   : > { %p810_p4 = pnand %p809_p5, %p640_p2 }
 0x1a9   : > { %p811_p6 = pneg %p810_p4 }
 0x1ab   : > { %p816_p11 = pnand %p814_p10, %p811_p6 }
 0x1ad   : > { %819 = shalt.err (!%p816_p11)
}
 0x1ae   : > { %626 = dma.vmem_to_hbm [thread:$0]  (%p640_p2), %s474_s9, 16, %s1232_s5, [#allocation7]  }
 0x1af   : > { %861 = dma.done.wait (%p640_p2), [#allocation7], 16  }
 0x1b0   : > { %863 = vsyncadd (%p640_p2), [#allocation7], 4294967280 }
 0x1b1 PF: > { %p20_p1 = scmp.ge.s32.totalorder %s966_s0, 4   ;;  %s1246_s20 = smov %s870_s21 }
 0x1b2   : > { %s1247_s21 = smov %s874_s22  ;;  %s1248_s22 = smov %s1106_s13 }
 0x1b3   : > { %s1249_s23 = smov %s882_s24  ;;  %s1250_s24 = smov %s886_s25 }
 0x1b4   : > { %s1251_s25 = smov %s985_s6  ;;  %s1252_s26 = smov %s966_s0 }
 0x1b5   :  { %22 = sbr.rel (!%p20_p1) target bundleno = 10 (0xa), region = 120 }
 0x1bc   :  { %486 = vsyncpa [#allocation6], 1 }
 0x1bd   :  { %488 = vsyncpa [#allocation6 + $0x1], 1 }
 0x1be   :  { %489 = vsyncpa [#allocation9], 1 }
 0x1bf   :  { %491 = vsyncpa [#allocation9 + $0x1], 1 }
 0x1c0   :  { %492 = vsyncpa [#allocation7], 1 }
 0x1c1   :  { %494 = vsyncpa [#allocation7 + $0x1], 1 }

</bundles_post_ra>
